<compile_context>
chip_gen: v7x
topology: tpu7x:2x2x1
jax: 0.10.0
libtpu: 0.0.40
codegen_flags: <defaults>
</compile_context>

<pallas_src>
import functools
import math

import jax
import jax.numpy as jnp
from jax.experimental import pallas as pl
from jax.experimental.pallas import tpu as pltpu

LN_EPS = 1e-5
TILE_M = 512          # token-tile for LN/QKV/MLP/patch-embed kernels
TILE_Q = 512          # flash-attention query tile
TILE_K = 512          # flash-attention key tile
VMEM_LIMIT = 40 * 1024 * 1024   # <= 64 MiB physical on v7x, leave headroom


def _cparams(dims):
    return pltpu.CompilerParams(dimension_semantics=dims,
                                vmem_limit_bytes=VMEM_LIMIT)


# ----------------------------- in-kernel helpers -----------------------------
def _layernorm(x, gamma, beta):
    mu = jnp.mean(x, axis=-1, keepdims=True)
    var = jnp.mean((x - mu) ** 2, axis=-1, keepdims=True)
    return (x - mu) * jax.lax.rsqrt(var + LN_EPS) * gamma + beta


def _gelu(x):
    # tanh approximation: transcendental runs on the EUP (otherwise-idle slot);
    # |err| vs exact erf GELU ~1e-3, below the bf16-matmul noise floor here.
    c = math.sqrt(2.0 / math.pi)
    return 0.5 * x * (1.0 + jnp.tanh(c * (x + 0.044715 * x * x * x)))


# ------------------------- OverlapPatchEmbed kernel --------------------------
def _patch_embed_kernel(p_ref, w_ref, b_ref, g_ref, be_ref, o_ref):
    # conv (as im2col matmul, bf16 -> f32 accumulate) + bias + LayerNorm
    y = jnp.dot(p_ref[...], w_ref[...],
                preferred_element_type=jnp.float32) + b_ref[...]
    o_ref[...] = _layernorm(y, g_ref[...], be_ref[...]).astype(o_ref.dtype)


@jax.jit
def patch_embed_apply(patches, w, b, gamma, beta):
    m, kdim = patches.shape
    c = w.shape[1]
    tm = min(TILE_M, m)
    return pl.pallas_call(
        _patch_embed_kernel,
        out_shape=jax.ShapeDtypeStruct((m, c), jnp.bfloat16),
        grid=(pl.cdiv(m, tm),),
        in_specs=[
            pl.BlockSpec((tm, kdim), lambda i: (i, 0)),
            pl.BlockSpec((kdim, c), lambda i: (0, 0)),
            pl.BlockSpec((1, c), lambda i: (0, 0)),
            pl.BlockSpec((1, c), lambda i: (0, 0)),
            pl.BlockSpec((1, c), lambda i: (0, 0)),
        ],
        out_specs=pl.BlockSpec((tm, c), lambda i: (i, 0)),
        compiler_params=_cparams(("parallel",)),
    )(patches, w, b, gamma, beta)


# ------------------------ MixTransformerBlock kernels ------------------------
def _ln_qkv_kernel(x_ref, g_ref, b_ref, wq_ref, bq_ref, wk_ref, bk_ref,
                   wv_ref, bv_ref, q_ref, k_ref, v_ref):
    # pre-norm + Q/K/V projections.  1/sqrt(d) is folded into wq/bq at init.
    x1 = _layernorm(x_ref[...].astype(jnp.float32),
                    g_ref[...], b_ref[...]).astype(jnp.bfloat16)
    q_ref[...] = (jnp.dot(x1, wq_ref[...], preferred_element_type=jnp.float32)
                  + bq_ref[...]).astype(q_ref.dtype)
    k_ref[...] = (jnp.dot(x1, wk_ref[...], preferred_element_type=jnp.float32)
                  + bk_ref[...]).astype(k_ref.dtype)
    v_ref[...] = (jnp.dot(x1, wv_ref[...], preferred_element_type=jnp.float32)
                  + bv_ref[...]).astype(v_ref.dtype)


def _attn_kernel(x_ref, q_ref, k_ref, v_ref, wo_ref, bo_ref, o_ref,
                 ctx_sc, m_sc, l_sc, *, nh, d):
    # Flash-style attention.  grid = (batch * q-tiles [parallel], k-tiles
    # [arbitrary]).  Heads are a short static loop; head columns live on the
    # lane axis so ctx accumulates directly into its final (tq, C) layout and
    # the output projection is a single K=C matmul at the last key tile.
    j = pl.program_id(1)
    n_kt = pl.num_programs(1)

    @pl.when(j == 0)
    def _():
        m_sc[...] = jnp.full_like(m_sc, -jnp.inf)
        l_sc[...] = jnp.zeros_like(l_sc)
        ctx_sc[...] = jnp.zeros_like(ctx_sc)

    q = q_ref[0]            # (tq, C) bf16, q pre-scaled by 1/sqrt(d)
    k = k_ref[0]            # (tk, C) bf16
    v = v_ref[0]            # (tk, C) bf16

    for h in range(nh):
        sl = slice(h * d, (h + 1) * d)
        s = jax.lax.dot_general(q[:, sl], k[:, sl], (((1,), (1,)), ((), ())),
                                preferred_element_type=jnp.float32)   # (tq, tk)
        m_prev = m_sc[:, h:h + 1]                                     # (tq, 1)
        m_new = jnp.maximum(m_prev, jnp.max(s, axis=-1, keepdims=True))
        alpha = jnp.exp(m_prev - m_new)
        p = jnp.exp(s - m_new)                                        # (tq, tk)
        l_sc[:, h:h + 1] = alpha * l_sc[:, h:h + 1] + jnp.sum(
            p, axis=-1, keepdims=True)
        m_sc[:, h:h + 1] = m_new
        ctx_sc[:, sl] = alpha * ctx_sc[:, sl] + jnp.dot(
            p.astype(jnp.bfloat16), v[:, sl],
            preferred_element_type=jnp.float32)

    @pl.when(j == n_kt - 1)
    def _():
        inv = pl.reciprocal(l_sc[...], approx=True)                   # (tq, nh)
        for h in range(nh):
            sl = slice(h * d, (h + 1) * d)
            ctx_sc[:, sl] = ctx_sc[:, sl] * inv[:, h:h + 1]
        out = jnp.dot(ctx_sc[...].astype(jnp.bfloat16), wo_ref[...],
                      preferred_element_type=jnp.float32) + bo_ref[...]
        o_ref[0] = (x_ref[0].astype(jnp.float32) + out).astype(o_ref.dtype)


def _mlp_kernel(x_ref, g_ref, b_ref, w1_ref, b1_ref, w2_ref, b2_ref, o_ref):
    x = x_ref[...].astype(jnp.float32)
    x2 = _layernorm(x, g_ref[...], b_ref[...]).astype(jnp.bfloat16)
    hmid = jnp.dot(x2, w1_ref[...],
                   preferred_element_type=jnp.float32) + b1_ref[...]
    hmid = _gelu(hmid).astype(jnp.bfloat16)
    y = jnp.dot(hmid, w2_ref[...],
                preferred_element_type=jnp.float32) + b2_ref[...]
    o_ref[...] = (x + y).astype(o_ref.dtype)                          # residual 2


@functools.partial(jax.jit, static_argnums=(0, 1, 2))
def block_apply(num_heads, batch, seq, x_tok, blk):
    (g1, b1, wq, bq, wk, bk, wv, bv, wo, bo, g2, b2, w1, bb1, w2, bb2) = blk
    m, c = x_tok.shape
    nh = num_heads
    d = c // nh
    tm = min(TILE_M, m)
    grid_m = pl.cdiv(m, tm)

    # ----- LayerNorm + fused QKV projection (q pre-scaled at init) -----------
    q, k, v = pl.pallas_call(
        _ln_qkv_kernel,
        out_shape=(jax.ShapeDtypeStruct((m, c), jnp.bfloat16),) * 3,
        grid=(grid_m,),
        in_specs=[
            pl.BlockSpec((tm, c), lambda i: (i, 0)),
            pl.BlockSpec((1, c), lambda i: (0, 0)),
            pl.BlockSpec((1, c), lambda i: (0, 0)),
            pl.BlockSpec((c, c), lambda i: (0, 0)),
            pl.BlockSpec((1, c), lambda i: (0, 0)),
            pl.BlockSpec((c, c), lambda i: (0, 0)),
            pl.BlockSpec((1, c), lambda i: (0, 0)),
            pl.BlockSpec((c, c), lambda i: (0, 0)),
            pl.BlockSpec((1, c), lambda i: (0, 0)),
        ],
        out_specs=(pl.BlockSpec((tm, c), lambda i: (i, 0)),) * 3,
        compiler_params=_cparams(("parallel",)),
    )(x_tok, g1, b1, wq, bq, wk, bk, wv, bv)

    # (B, L, C) views are leading-axis reshapes: no HBM data movement.
    x3 = x_tok.reshape(batch, seq, c)
    q3 = q.reshape(batch, seq, c)
    k3 = k.reshape(batch, seq, c)
    v3 = v.reshape(batch, seq, c)

    tq = min(TILE_Q, seq)
    tk = min(TILE_K, seq)
    n_qt = pl.cdiv(seq, tq)
    n_kt = pl.cdiv(seq, tk)

    attn = pl.pallas_call(
        functools.partial(_attn_kernel, nh=nh, d=d),
        out_shape=jax.ShapeDtypeStruct((batch, seq, c), jnp.bfloat16),
        grid=(batch * n_qt, n_kt),
        in_specs=[
            pl.BlockSpec((1, tq, c), lambda i, j: (i // n_qt, i % n_qt, 0)),
            pl.BlockSpec((1, tq, c), lambda i, j: (i // n_qt, i % n_qt, 0)),
            pl.BlockSpec((1, tk, c), lambda i, j: (i // n_qt, j, 0)),
            pl.BlockSpec((1, tk, c), lambda i, j: (i // n_qt, j, 0)),
            pl.BlockSpec((c, c), lambda i, j: (0, 0)),
            pl.BlockSpec((1, c), lambda i, j: (0, 0)),
        ],
        out_specs=pl.BlockSpec((1, tq, c), lambda i, j: (i // n_qt, i % n_qt, 0)),
        scratch_shapes=[
            pltpu.VMEM((tq, c), jnp.float32),    # per-head ctx accumulator
            pltpu.VMEM((tq, nh), jnp.float32),   # running max (per head)
            pltpu.VMEM((tq, nh), jnp.float32),   # running denom (per head)
        ],
        compiler_params=_cparams(("parallel", "arbitrary")),
    )(x3, q3, k3, v3, wo, bo)

    x_attn = attn.reshape(m, c)

    # ----- LayerNorm + MLP (GELU) + residual ---------------------------------
    return pl.pallas_call(
        _mlp_kernel,
        out_shape=jax.ShapeDtypeStruct((m, c), jnp.bfloat16),
        grid=(grid_m,),
        in_specs=[
            pl.BlockSpec((tm, c), lambda i: (i, 0)),
            pl.BlockSpec((1, c), lambda i: (0, 0)),
            pl.BlockSpec((1, c), lambda i: (0, 0)),
            pl.BlockSpec((c, 4 * c), lambda i: (0, 0)),
            pl.BlockSpec((1, 4 * c), lambda i: (0, 0)),
            pl.BlockSpec((4 * c, c), lambda i: (0, 0)),
            pl.BlockSpec((1, c), lambda i: (0, 0)),
        ],
        out_specs=pl.BlockSpec((tm, c), lambda i: (i, 0)),
        compiler_params=_cparams(("parallel",)),
    )(x_attn, g2, b2, w1, bb1, w2, bb2)


# ----------------------------- parameters / glue ------------------------------
STAGE_CFGS = (
    dict(dim=64, patch=7, stride=4, heads=1, depth=3),
    dict(dim=128, patch=3, stride=2, heads=2, depth=6),
    dict(dim=320, patch=3, stride=2, heads=5, depth=18),
    dict(dim=512, patch=3, stride=2, heads=8, depth=3),
)


def _normal(key, shape, scale=0.02, dtype=jnp.bfloat16):
    return (scale * jax.random.normal(key, shape)).astype(dtype)


def init_params(key, in_ch):
    params = []
    prev = in_ch
    for cfg in STAGE_CFGS:
        key, kpe = jax.random.split(key)
        dim, kk, heads = cfg["dim"], cfg["patch"], cfg["heads"]
        d = dim // heads
        qscale = 1.0 / math.sqrt(d)
        pe = dict(
            w=_normal(kpe, (prev * kk * kk, dim)),          # im2col conv weight (bf16)
            b=jnp.zeros((1, dim), jnp.float32),
            gamma=jnp.ones((1, dim), jnp.float32),
            beta=jnp.zeros((1, dim), jnp.float32),
        )
        blocks = []
        for _ in range(cfg["depth"]):
            key, kb = jax.random.split(key)
            ks = jax.random.split(kb, 6)
            hid = dim * 4
            # 1/sqrt(d) folded into the q projection (weight + bias) at init.
            wq = (qscale * 0.02 * jax.random.normal(ks[0], (dim, dim))
                  ).astype(jnp.bfloat16)
            bq = qscale * jnp.zeros((1, dim), jnp.float32)
            blocks.append((
                jnp.ones((1, dim), jnp.float32), jnp.zeros((1, dim), jnp.float32),  # ln1
                wq, bq,                                                              # Wq (scaled), bq
                _normal(ks[1], (dim, dim)), jnp.zeros((1, dim), jnp.float32),        # Wk, bk
                _normal(ks[2], (dim, dim)), jnp.zeros((1, dim), jnp.float32),        # Wv, bv
                _normal(ks[3], (dim, dim)), jnp.zeros((1, dim), jnp.float32),        # Wo (C,C), bo
                jnp.ones((1, dim), jnp.float32), jnp.zeros((1, dim), jnp.float32),  # ln2
                _normal(ks[4], (dim, hid)), jnp.zeros((1, hid), jnp.float32),        # fc1
                _normal(ks[5], (hid, dim)), jnp.zeros((1, dim), jnp.float32),        # fc2
            ))
        params.append(dict(pe=pe, blocks=blocks))
        prev = dim
    return params


def im2col_cl(x, k, s, p):
    """channels-last (B, H, W, Cin) -> (B, Ho*Wo, k*k*Cin) patches, (ki,kj,cin) order."""
    bsz, h, w, cin = x.shape
    ho = (h + 2 * p - k) // s + 1
    wo = (w + 2 * p - k) // s + 1
    xp = jnp.pad(x, ((0, 0), (p, p), (p, p), (0, 0)))
    cols = []
    for ki in range(k):
        for kj in range(k):
            cols.append(xp[:, ki:ki + s * (ho - 1) + 1:s,
                           kj:kj + s * (wo - 1) + 1:s, :])
    patches = jnp.concatenate(cols, axis=-1)            # (B, Ho, Wo, k*k*Cin)
    return patches.reshape(bsz, ho * wo, k * k * cin), ho, wo


def mit_b3_forward(x, params):
    """x: NCHW float32 -> tuple of 4 NCHW float32 stage outputs."""
    outs = []
    # single NCHW -> channels-last transpose on entry; stages stay channels-last.
    cur = jnp.transpose(x, (0, 2, 3, 1)).astype(jnp.bfloat16)
    for cfg, stage in zip(STAGE_CFGS, params):
        k, s = cfg["patch"], cfg["stride"]
        # TODO(synk): stream the k*k tap gather inside the patch-embed kernel
        # (scalar-prefetched offsets) instead of materializing patches in HBM.
        patches, ho, wo_sz = im2col_cl(cur, k, s, k // 2)
        bsz, seq, kdim = patches.shape
        pe = stage["pe"]
        y = patch_embed_apply(patches.reshape(bsz * seq, kdim),
                              pe["w"], pe["b"], pe["gamma"], pe["beta"])
        for blk in stage["blocks"]:
            y = block_apply(cfg["heads"], bsz, seq, y, blk)
        dim = cfg["dim"]
        cur = y.reshape(bsz, ho, wo_sz, dim)                 # stays channels-last
        outs.append(jnp.transpose(cur, (0, 3, 1, 2)).astype(jnp.float32))
    return tuple(outs)


if __name__ == "__main__":
    key = jax.random.PRNGKey(0)
    kx, kp = jax.random.split(key)
    in_ch = 3
    x = jax.random.normal(kx, (2, in_ch, 32, 32), dtype=jnp.float32)
    params = init_params(kp, in_ch)

    x1, x2, x3, x4 = mit_b3_forward(x, params)
    jax.block_until_ready((x1, x2, x3, x4))

    assert x1.shape == (2, 64, 8, 8)
    assert x2.shape == (2, 128, 4, 4)
    assert x3.shape == (2, 320, 2, 2)
    assert x4.shape == (2, 512, 1, 1)
    assert all(bool(jnp.isfinite(o).all()) for o in (x1, x2, x3, x4))
    print("KERNEL_OK")
</pallas_src>

<mosaic_0001>
module attributes {stable_mosaic.version = 11 : i64} {
  func.func @_patch_embed_kernel(%arg0: i32, %arg1: memref<128x147xbf16, #tpu.memory_space<vmem>>, %arg2: memref<147x64xbf16, #tpu.memory_space<vmem>>, %arg3: memref<1x64xf32, #tpu.memory_space<vmem>>, %arg4: memref<1x64xf32, #tpu.memory_space<vmem>>, %arg5: memref<1x64xf32, #tpu.memory_space<vmem>>, %arg6: memref<128x64xbf16, #tpu.memory_space<vmem>>) attributes {dimension_semantics = [#tpu.dimension_semantics<parallel>], iteration_bounds = array<i64: 1>, scalar_prefetch = 0 : i64, scratch_operands = 0 : i64, tpu.core_type = #tpu.core_type<tc>, window_params = [{transform_indices = @transform_0, window_bounds = array<i64: 128, 147>}, {pipeline_mode = #tpu.pipeline_mode<synchronous>, transform_indices = @transform_1, window_bounds = array<i64: 147, 64>}, {pipeline_mode = #tpu.pipeline_mode<synchronous>, transform_indices = @transform_2, window_bounds = array<i64: 1, 64>}, {pipeline_mode = #tpu.pipeline_mode<synchronous>, transform_indices = @transform_3, window_bounds = array<i64: 1, 64>}, {pipeline_mode = #tpu.pipeline_mode<synchronous>, transform_indices = @transform_4, window_bounds = array<i64: 1, 64>}, {transform_indices = @transform_5, window_bounds = array<i64: 128, 64>}]} {
    %c0 = arith.constant 0 : index
    %c0_0 = arith.constant 0 : index
    %0 = vector.load %arg1[%c0, %c0_0] : memref<128x147xbf16, #tpu.memory_space<vmem>>, vector<128x147xbf16>
    %c0_1 = arith.constant 0 : index
    %c0_2 = arith.constant 0 : index
    %1 = vector.load %arg2[%c0_1, %c0_2] : memref<147x64xbf16, #tpu.memory_space<vmem>>, vector<147x64xbf16>
    %cst = arith.constant dense<0.000000e+00> : vector<128x64xf32>
    %2 = tpu.matmul %0, %1, %cst {dimension_numbers = #tpu.dot_dimension_numbers<[1], [0], [0], [1], [0, 0, 1, 1], [], []>} : vector<128x147xbf16>, vector<147x64xbf16>, vector<128x64xf32> -> vector<128x64xf32>
    %c0_3 = arith.constant 0 : index
    %c0_4 = arith.constant 0 : index
    %3 = vector.load %arg3[%c0_3, %c0_4] : memref<1x64xf32, #tpu.memory_space<vmem>>, vector<1x64xf32>
    %4 = vector.broadcast %3 : vector<1x64xf32> to vector<128x64xf32>
    %5 = arith.addf %2, %4 : vector<128x64xf32>
    %c0_5 = arith.constant 0 : index
    %c0_6 = arith.constant 0 : index
    %6 = vector.load %arg4[%c0_5, %c0_6] : memref<1x64xf32, #tpu.memory_space<vmem>>, vector<1x64xf32>
    %c0_7 = arith.constant 0 : index
    %c0_8 = arith.constant 0 : index
    %7 = vector.load %arg5[%c0_7, %c0_8] : memref<1x64xf32, #tpu.memory_space<vmem>>, vector<1x64xf32>
    %cst_9 = arith.constant dense<0.000000e+00> : vector<128xf32>
    %8 = vector.multi_reduction <add>, %5, %cst_9 [1] : vector<128x64xf32> to vector<128xf32>
    %9 = vector.shape_cast %8 : vector<128xf32> to vector<128x1xf32>
    %cst_10 = arith.constant 6.400000e+01 : f32
    %10 = vector.broadcast %cst_10 : f32 to vector<128x1xf32>
    %11 = arith.divf %9, %10 : vector<128x1xf32>
    %12 = vector.broadcast %11 : vector<128x1xf32> to vector<128x64xf32>
    %13 = arith.subf %5, %12 : vector<128x64xf32>
    %14 = arith.mulf %13, %13 : vector<128x64xf32>
    %cst_11 = arith.constant dense<0.000000e+00> : vector<128xf32>
    %15 = vector.multi_reduction <add>, %14, %cst_11 [1] : vector<128x64xf32> to vector<128xf32>
    %16 = vector.shape_cast %15 : vector<128xf32> to vector<128x1xf32>
    %cst_12 = arith.constant 6.400000e+01 : f32
    %17 = vector.broadcast %cst_12 : f32 to vector<128x1xf32>
    %18 = arith.divf %16, %17 : vector<128x1xf32>
    %19 = vector.broadcast %11 : vector<128x1xf32> to vector<128x64xf32>
    %20 = arith.subf %5, %19 : vector<128x64xf32>
    %cst_13 = arith.constant 9.99999974E-6 : f32
    %21 = vector.broadcast %cst_13 : f32 to vector<128x1xf32>
    %22 = arith.addf %18, %21 : vector<128x1xf32>
    %23 = math.rsqrt %22 : vector<128x1xf32>
    %24 = vector.broadcast %23 : vector<128x1xf32> to vector<128x64xf32>
    %25 = arith.mulf %20, %24 : vector<128x64xf32>
    %26 = vector.broadcast %6 : vector<1x64xf32> to vector<128x64xf32>
    %27 = arith.mulf %25, %26 : vector<128x64xf32>
    %28 = vector.broadcast %7 : vector<1x64xf32> to vector<128x64xf32>
    %29 = arith.addf %27, %28 : vector<128x64xf32>
    %30 = arith.truncf %29 : vector<128x64xf32> to vector<128x64xbf16>
    %c0_14 = arith.constant 0 : index
    %c0_15 = arith.constant 0 : index
    %31 = vector.load %arg6[%c0_14, %c0_15] : memref<128x64xbf16, #tpu.memory_space<vmem>>, vector<128x64xbf16>
    tpu.vector_store %arg6[%c0_14, %c0_15], %30 {strides = array<i32>} : memref<128x64xbf16, #tpu.memory_space<vmem>>, vector<128x64xbf16>,
    return
  }
  func.func @transform_0(%arg0: i32) -> (i32, i32) {
    %c0_i32 = arith.constant 0 : i32
    %c0_i32_0 = arith.constant 0 : i32
    return %arg0, %c0_i32 : i32, i32
  }
  func.func @transform_1(%arg0: i32) -> (i32, i32) {
    %c0_i32 = arith.constant 0 : i32
    %c0_i32_0 = arith.constant 0 : i32
    %c0_i32_1 = arith.constant 0 : i32
    return %c0_i32, %c0_i32_0 : i32, i32
  }
  func.func @transform_2(%arg0: i32) -> (i32, i32) {
    %c0_i32 = arith.constant 0 : i32
    %c0_i32_0 = arith.constant 0 : i32
    %c0_i32_1 = arith.constant 0 : i32
    return %c0_i32, %c0_i32_0 : i32, i32
  }
  func.func @transform_3(%arg0: i32) -> (i32, i32) {
    %c0_i32 = arith.constant 0 : i32
    %c0_i32_0 = arith.constant 0 : i32
    %c0_i32_1 = arith.constant 0 : i32
    return %c0_i32, %c0_i32_0 : i32, i32
  }
  func.func @transform_4(%arg0: i32) -> (i32, i32) {
    %c0_i32 = arith.constant 0 : i32
    %c0_i32_0 = arith.constant 0 : i32
    %c0_i32_1 = arith.constant 0 : i32
    return %c0_i32, %c0_i32_0 : i32, i32
  }
  func.func @transform_5(%arg0: i32) -> (i32, i32) {
    %c0_i32 = arith.constant 0 : i32
    %c0_i32_0 = arith.constant 0 : i32
    return %arg0, %c0_i32 : i32, i32
  }
}

</mosaic_0001>

<bundles_post_ra>
// kernel: patch_embed_apply.1
= control target key start
LH: loop header
LB: loop body
LE: loop exit
PB: predicated region body
PF: predicated region fallthrough
CT: control target
= control target key end

     0   :  { %v819_v0 = vmov 0   ;;  %vm192_vm0 = vcmask 154624   ;;  %vm217_vm1 = vcmask 1040384   ;;  %vm218_vm2 = vcmask 1041408   ;;  %s1240_s1 = inlined_call_operand.vmem [shape: bf16[147,64], index: 1, kind: input, shape index: {}]   ;;  %s1241_s0 = inlined_call_operand.vmem [shape: bf16[128,147], index: 0, kind: input, shape index: {}]   ;;  %s1242_s2 = inlined_call_operand.vmem [shape: f32[1,64], index: 2, kind: input, shape index: {}]   ;;  %s1243_s3 = inlined_call_operand.vmem [shape: f32[1,64], index: 3, kind: input, shape index: {}]   ;;  %s1244_s4 = inlined_call_operand.vmem [shape: f32[1,64], index: 4, kind: input, shape index: {}]   ;;  %s1245_s5 = inlined_call_operand.vmem [shape: bf16[128,64], index: 5, kind: output, shape index: {}]  }
   0x1   :  { %224 = vmatprep.subr.bf16.mxu0 %v819_v0  ;;  %731 = vmatprep.subr.bf16.mxu1 %v819_v0  ;;  %v753_v1 = vld [vmem:[%s1240_s1] sm:$0xff]   ;;  %v754_v2 = vld [vmem:[%s1240_s1 + $0x8] sm:$0xff]   ;;  %v755_v3 = vld [vmem:[%s1240_s1 + $0x10] sm:$0xff]   ;;  %v820_v11 = vmov 65535   ;;  %vm323_vm3 = vcmask 523264   ;;  %vm641_vm4 = vcmask 519168  }
   0x2   :  { %225 = vmatpush1.bf16.msra.mxu0 %v753_v1  ;;  %741 = vmatpush1.bf16.msra.mxu1 %v753_v1  ;;  %v756_v4 = vld [vmem:[%s1240_s1 + $0x18] sm:$0xff]   ;;  %v765_v5 = vld [vmem:[%s1241_s0 + $0x4] ss:$8 sps:$4 sm:$0xff]   ;;  %v759_v9 = vld [vmem:[%s1240_s1 + $0x30] sm:$0xff]   ;;  %v219_v12 = vsel %vm217_vm1, 4294967295, %v820_v11 }
   0x3   :  { %226 = vmatprep.subr.bf16.mxu0 %v819_v0  ;;  %732 = vmatprep.subr.bf16.mxu1 %v819_v0  ;;  %v768_v6 = vld [vmem:[%s1241_s0 + $0x44] ss:$8 sps:$4 sm:$0xff]   ;;  %v760_v10 = vld [vmem:[%s1240_s1 + $0x38] sm:$0xff]   ;;  %v762_v14 = vld [vmem:[%s1240_s1 + $0x48] ss:$0 sps:$4 sm:$0x33]  }
   0x4   :  { %689 = vmatprep.mubr.msk.bf16.mxu0 %vm192_vm0, %v765_v5  ;;  %v757_v7 = vld [vmem:[%s1240_s1 + $0x20] sm:$0xff]   ;;  %693 = vmatprep.mubr.msk.bf16.mxu1 %vm192_vm0, %v768_v6  ;;  %v758_v8 = vld [vmem:[%s1240_s1 + $0x28] sm:$0xff]   ;;  %v220_v15 = vsel %vm218_vm2, %v219_v12, 0  ;;  %v769_v19 = vld [vmem:[%s1241_s0 + $0x14] ss:$8 sps:$4 sm:$0xff]  }
   0x5   :  { %v761_v13 = vld [vmem:[%s1240_s1 + $0x40] sm:$0xff]   ;;  %v222_v16 = vand.u32 %v762_v14, %v220_v15  ;;  %v772_v20 = vld [vmem:[%s1241_s0 + $0x54] ss:$8 sps:$4 sm:$0xff]   ;;  %v771_v21 = vld [vmem:[%s1241_s0 + $0x10] ss:$8 sps:$4 sm:$0xff]  }
   0x6   :  { %227 = vmatpush1.bf16.msra.mxu0 %v754_v2  ;;  %742 = vmatpush1.bf16.msra.mxu1 %v754_v2  ;;  %v763_v17 = vld [vmem:[%s1241_s0] ss:$8 sps:$4 sm:$0xff]   ;;  %v774_v22 = vld [vmem:[%s1241_s0 + $0x50] ss:$8 sps:$4 sm:$0xff]   ;;  %v775_v23 = vld [vmem:[%s1241_s0 + $0x24] ss:$8 sps:$4 sm:$0xff]  }
   0x7   :  { %228 = vmatprep.subr.bf16.mxu0 %v819_v0  ;;  %733 = vmatprep.subr.bf16.mxu1 %v819_v0  ;;  %v766_v18 = vld [vmem:[%s1241_s0 + $0x40] ss:$8 sps:$4 sm:$0xff]   ;;  %v778_v24 = vld [vmem:[%s1241_s0 + $0x64] ss:$8 sps:$4 sm:$0xff]   ;;  %v781_v27 = vld [vmem:[%s1241_s0 + $0x34] ss:$8 sps:$4 sm:$0xff]  }
   0x8   :  { %v777_v25 = vld [vmem:[%s1241_s0 + $0x20] ss:$8 sps:$4 sm:$0xff]   ;;  %v784_v28 = vld [vmem:[%s1241_s0 + $0x74] ss:$8 sps:$4 sm:$0xff]   ;;  %v783_v29 = vld [vmem:[%s1241_s0 + $0x30] ss:$8 sps:$4 sm:$0xff]  }
   0x9   :  { %v780_v26 = vld [vmem:[%s1241_s0 + $0x60] ss:$8 sps:$4 sm:$0xff]   ;;  %v786_v30 = vld [vmem:[%s1241_s0 + $0x70] ss:$8 sps:$4 sm:$0xff]  }
   0xa   :  { %229 = vmatpush1.bf16.msra.mxu0 %v755_v3  ;;  %743 = vmatpush1.bf16.msra.mxu1 %v755_v3  ;;  %v940_v31 = vld [vmem:[%s1242_s2] ss:$0 sm:$0xff] }
   0xb   :  { %230 = vmatprep.subr.bf16.mxu0 %v819_v0  ;;  %734 = vmatprep.subr.bf16.mxu1 %v819_v0 }
   0xe   :  { %231 = vmatpush1.bf16.msra.mxu0 %v756_v4  ;;  %744 = vmatpush1.bf16.msra.mxu1 %v756_v4 }
   0xf   :  { %232 = vmatprep.subr.bf16.mxu0 %v819_v0  ;;  %735 = vmatprep.subr.bf16.mxu1 %v819_v0 }
  0x12   :  { %233 = vmatpush1.bf16.msra.mxu0 %v757_v7  ;;  %745 = vmatpush1.bf16.msra.mxu1 %v757_v7 }
  0x13   :  { %234 = vmatprep.subr.bf16.mxu0 %v819_v0  ;;  %736 = vmatprep.subr.bf16.mxu1 %v819_v0 }
  0x16   :  { %235 = vmatpush1.bf16.msra.mxu0 %v758_v8  ;;  %746 = vmatpush1.bf16.msra.mxu1 %v758_v8 }
  0x17   :  { %236 = vmatprep.subr.bf16.mxu0 %v819_v0  ;;  %737 = vmatprep.subr.bf16.mxu1 %v819_v0 }
  0x1a   :  { %237 = vmatpush1.bf16.msra.mxu0 %v759_v9  ;;  %747 = vmatpush1.bf16.msra.mxu1 %v759_v9 }
  0x1b   :  { %238 = vmatprep.subr.bf16.mxu0 %v819_v0  ;;  %738 = vmatprep.subr.bf16.mxu1 %v819_v0 }
  0x1e   :  { %239 = vmatpush1.bf16.msra.mxu0 %v760_v10  ;;  %748 = vmatpush1.bf16.msra.mxu1 %v760_v10 }
  0x1f   :  { %240 = vmatprep.subr.bf16.mxu0 %v819_v0  ;;  %739 = vmatprep.subr.bf16.mxu1 %v819_v0 }
  0x22   :  { %241 = vmatpush1.bf16.msra.mxu0 %v761_v13  ;;  %749 = vmatpush1.bf16.msra.mxu1 %v761_v13 }
  0x23   :  { %242 = vmatprep.subr.bf16.mxu0 %v819_v0  ;;  %740 = vmatprep.subr.bf16.mxu1 %v819_v0 }
  0x26   :  { %243 = vmatpush1.bf16.msra.mxu0 %v222_v16  ;;  %750 = vmatpush1.bf16.msra.mxu1 %v222_v16 }
  0x29   :  { %257 = vmatmul.mubr.bf16.vlgmr.msra.gmra.mrb[0].mxu0 %v763_v17  ;;  %289 = vmatmul.mubr.bf16.vlgmr.msra.gmra.mrb[0].mxu1 %v766_v18 }
  0x2a   :  { %690 = vmatprep.mubr.msk.bf16.mxu0 %vm192_vm0, %v769_v19  ;;  %694 = vmatprep.mubr.msk.bf16.mxu1 %vm192_vm0, %v772_v20 }
  0x31   :  { %265 = vmatmul.mubr.bf16.gmra.mrb[4].mxu0 %v771_v21  ;;  %297 = vmatmul.mubr.bf16.gmra.mrb[4].mxu1 %v774_v22 }
  0x32   :  { %691 = vmatprep.mubr.msk.bf16.mxu0 %vm192_vm0, %v775_v23  ;;  %695 = vmatprep.mubr.msk.bf16.mxu1 %vm192_vm0, %v778_v24 }
  0x39   :  { %273 = vmatmul.mubr.bf16.gmra.mrb[8].mxu0 %v777_v25  ;;  %305 = vmatmul.mubr.bf16.gmra.mrb[8].mxu1 %v780_v26 }
  0x3a   :  { %692 = vmatprep.mubr.msk.bf16.mxu0 %vm192_vm0, %v781_v27  ;;  %696 = vmatprep.mubr.msk.bf16.mxu1 %vm192_vm0, %v784_v28 }
  0x41   :  { %281 = vmatmul.mubr.bf16.gmra.mrb[12].mxu0 %v783_v29  ;;  %313 = vmatmul.mubr.bf16.gmra.mrb[12].mxu1 %v786_v30 }
  0xfc   :  { %v258_v32 = vpop.f32.mrb[0].mxu0  ;;  %v290_v33 = vpop.f32.mrb[0].mxu1 }
  0xfd   :  { %v943_v34 = vadd.f32 %v940_v31, %v258_v32  ;;  %v946_v35 = vadd.f32 %v940_v31, %v290_v33  ;;  %v260_v36 = vpop.f32.mrb[1].mxu0  ;;  %v292_v37 = vpop.f32.mrb[1].mxu1 }
  0xfe   :  { %v261_v38 = vpop.f32.mrb[2].mxu0  ;;  %v293_v39 = vpop.f32.mrb[2].mxu1 }
  0xff   :  { %v949_v40 = vadd.f32 %v940_v31, %v293_v39  ;;  %v263_v41 = vpop.f32.mrb[3].mxu0  ;;  %v295_v42 = vpop.f32.mrb[3].mxu1  ;;  %v324_v43 = vsel %vm323_vm3, %v943_v34, 0.0  ;;  %v348_v45 = vsel %vm323_vm3, %v946_v35, 0.0  ;;  %v958_v46 = vadd.f32 %v940_v31, %v261_v38 }
 0x100   :  { %325 = vadd.xlane.f32.xlu0 %v324_v43 }
 0x101   :  { %v351_v44 = vsel %vm323_vm3, %v949_v40, 0.0  ;;  %v327_v58 = vsel %vm323_vm3, %v958_v46, 0.0 }
 0x102   :  { %352 = vadd.xlane.f32.xlu1 %v351_v44 }
 0x104   :  { %v266_v47 = vpop.f32.mrb[4].mxu0  ;;  %349 = vadd.xlane.f32.xlu0 %v348_v45  ;;  %v298_v48 = vpop.f32.mrb[4].mxu1 }
 0x105   :  { %v961_v49 = vadd.f32 %v940_v31, %v266_v47  ;;  %v268_v50 = vpop.f32.mrb[5].mxu0  ;;  %v964_v51 = vadd.f32 %v940_v31, %v298_v48  ;;  %v300_v52 = vpop.f32.mrb[5].mxu1 }
 0x106   :  { %v269_v53 = vpop.f32.mrb[6].mxu0  ;;  %v301_v54 = vpop.f32.mrb[6].mxu1 }
 0x107   :  { %v967_v55 = vadd.f32 %v940_v31, %v269_v53  ;;  %v271_v56 = vpop.f32.mrb[7].mxu0  ;;  %v330_v57 = vsel %vm323_vm3, %v961_v49, 0.0  ;;  %v303_v59 = vpop.f32.mrb[7].mxu1  ;;  %v974_v60 = vadd.f32 %v940_v31, %v301_v54  ;;  %v354_v62 = vsel %vm323_vm3, %v964_v51, 0.0 }
 0x108   :  { %331 = vadd.xlane.f32.xlu1 %v330_v57  ;;  %328 = vadd.xlane.f32.xlu0 %v327_v58 }
 0x109   :  { %v333_v61 = vsel %vm323_vm3, %v967_v55, 0.0  ;;  %v357_v4 = vsel %vm323_vm3, %v974_v60, 0.0 }
 0x10c   :  { %v274_v63 = vpop.f32.mrb[8].mxu0  ;;  %334 = vadd.xlane.f32.xlu1 %v333_v61  ;;  %355 = vadd.xlane.f32.xlu0 %v354_v62  ;;  %v306_v0 = vpop.f32.mrb[8].mxu1 }
 0x10d   :  { %v981_v1 = vadd.f32 %v940_v31, %v274_v63  ;;  %v276_v2 = vpop.f32.mrb[9].mxu0  ;;  %v984_v3 = vadd.f32 %v940_v31, %v306_v0  ;;  %v308_v5 = vpop.f32.mrb[9].mxu1 }
 0x10e   :  { %v277_v6 = vpop.f32.mrb[10].mxu0  ;;  %v309_v7 = vpop.f32.mrb[10].mxu1 }
 0x10f   :  { %v989_v8 = vadd.f32 %v940_v31, %v277_v6  ;;  %v336_v9 = vsel %vm323_vm3, %v981_v1, 0.0  ;;  %v279_v10 = vpop.f32.mrb[11].mxu0  ;;  %v311_v11 = vpop.f32.mrb[11].mxu1  ;;  %v994_v12 = vadd.f32 %v940_v31, %v309_v7  ;;  %v360_v14 = vsel %vm323_vm3, %v984_v3, 0.0 }
 0x110   :  { %358 = vadd.xlane.f32.xlu1 %v357_v4  ;;  %337 = vadd.xlane.f32.xlu0 %v336_v9 }
 0x111   :  { %v339_v13 = vsel %vm323_vm3, %v989_v8, 0.0  ;;  %v363_v20 = vsel %vm323_vm3, %v994_v12, 0.0 }
 0x114   :  { %v282_v15 = vpop.f32.mrb[12].mxu0  ;;  %340 = vadd.xlane.f32.xlu1 %v339_v13  ;;  %361 = vadd.xlane.f32.xlu0 %v360_v14  ;;  %v314_v16 = vpop.f32.mrb[12].mxu1 }
 0x115   :  { %v1001_v17 = vadd.f32 %v940_v31, %v282_v15  ;;  %v284_v18 = vpop.f32.mrb[13].mxu0  ;;  %v1004_v19 = vadd.f32 %v940_v31, %v314_v16  ;;  %v316_v21 = vpop.f32.mrb[13].mxu1 }
 0x116   :  { %v285_v22 = vpop.f32.mrb[14].mxu0  ;;  %v317_v23 = vpop.f32.mrb[14].mxu1 }
 0x117   :  { %v1009_v24 = vadd.f32 %v940_v31, %v285_v22  ;;  %v342_v25 = vsel %vm323_vm3, %v1001_v17, 0.0  ;;  %v287_v26 = vpop.f32.mrb[15].mxu0  ;;  %v319_v27 = vpop.f32.mrb[15].mxu1  ;;  %v1014_v28 = vadd.f32 %v940_v31, %v317_v23  ;;  %v366_v30 = vsel %vm323_vm3, %v1004_v19, 0.0 }
 0x118   :  { %364 = vadd.xlane.f32.xlu1 %v363_v20  ;;  %343 = vadd.xlane.f32.xlu0 %v342_v25 }
 0x119   :  { %v345_v29 = vsel %vm323_vm3, %v1009_v24, 0.0  ;;  %v369_v32 = vsel %vm323_vm3, %v1014_v28, 0.0 }
 0x11c   :  { %346 = vadd.xlane.f32.xlu1 %v345_v29  ;;  %367 = vadd.xlane.f32.xlu0 %v366_v30 }
 0x120   :  { %370 = vadd.xlane.f32.xlu1 %v369_v32 }
 0x18d   :  { %v326_v33 = vpop.xlane.xlu0 %325 }
 0x18e   :  { %v373_v36 = vmul.f32 0.015625, %v326_v33 }
 0x18f   :  { %v353_v38 = vpop.xlane.xlu1 %352 }
 0x190   :  { %v1023_v37 = vsub.f32 %v943_v34, %v373_v36  ;;  %v382_v42 = vmul.f32 0.015625, %v353_v38 }
 0x191   :  { %v350_v31 = vpop.xlane.xlu0 %349 }
 0x192   :  { %v381_v39 = vmul.f32 0.015625, %v350_v31  ;;  %v405_v41 = vmul.f32 %v1023_v37, %v1023_v37  ;;  %v1034_v52 = vsub.f32 %v949_v40, %v382_v42 }
 0x194   :  { %v1028_v43 = vsub.f32 %v946_v35, %v381_v39  ;;  %v421_v44 = vsel %vm323_vm3, %v405_v41, 0.0 }
 0x195   :  { %v332_v45 = vpop.xlane.xlu1 %331  ;;  %422 = vadd.xlane.f32.xlu0 %v421_v44  ;;  %v329_v47 = vpop.xlane.xlu0 %328 }
 0x196   :  { %v375_v48 = vmul.f32 0.015625, %v332_v45  ;;  %v374_v50 = vmul.f32 0.015625, %v329_v47  ;;  %v413_v34 = vmul.f32 %v1028_v43, %v1028_v43 }
 0x198   :  { %v1037_v53 = vsub.f32 %v961_v49, %v375_v48  ;;  %v1040_v54 = vsub.f32 %v958_v46, %v374_v50  ;;  %v445_v35 = vsel %vm323_vm3, %v413_v34, 0.0  ;;  %v414_v49 = vmul.f32 %v1034_v52, %v1034_v52 }
 0x199   :  { %v335_v56 = vpop.xlane.xlu1 %334  ;;  %446 = vadd.xlane.f32.xlu0 %v445_v35  ;;  %v356_v57 = vpop.xlane.xlu0 %355 }
 0x19a   :  { %v376_v58 = vmul.f32 0.015625, %v335_v56  ;;  %v383_v59 = vmul.f32 0.015625, %v356_v57  ;;  %v407_v61 = vmul.f32 %v1037_v53, %v1037_v53  ;;  %v406_v40 = vmul.f32 %v1040_v54, %v1040_v54 }
 0x19b   :  { %v448_v10 = vsel %vm323_vm3, %v414_v49, 0.0 }
 0x19c   :  { %v1050_v62 = vsub.f32 %v967_v55, %v376_v58  ;;  %v1053_v46 = vsub.f32 %v964_v51, %v383_v59  ;;  %v427_v63 = vsel %vm323_vm3, %v407_v61, 0.0  ;;  %v424_v0 = vsel %vm323_vm3, %v406_v40, 0.0 }
 0x19d   :  { %v359_v2 = vpop.xlane.xlu1 %358  ;;  %428 = vadd.xlane.f32.xlu0 %v427_v63  ;;  %425 = vadd.xlane.f32.xlu1 %v424_v0  ;;  %v338_v4 = vpop.xlane.xlu0 %337 }
 0x19e   :  { %v384_v5 = vmul.f32 0.015625, %v359_v2  ;;  %v377_v6 = vmul.f32 0.015625, %v338_v4  ;;  %v415_v7 = vmul.f32 %v1053_v46, %v1053_v46  ;;  %v408_v55 = vmul.f32 %v1050_v62, %v1050_v62 }
 0x1a0   :  { %v1062_v9 = vsub.f32 %v974_v60, %v384_v5  ;;  %v1065_v51 = vsub.f32 %v981_v1, %v377_v6  ;;  %v451_v11 = vsel %vm323_vm3, %v415_v7, 0.0  ;;  %v430_v20 = vsel %vm323_vm3, %v408_v55, 0.0 }
 0x1a1   :  { %v341_v13 = vpop.xlane.xlu1 %340  ;;  %449 = vadd.xlane.f32.xlu1 %v448_v10  ;;  %452 = vadd.xlane.f32.xlu0 %v451_v11  ;;  %v362_v14 = vpop.xlane.xlu0 %361 }
 0x1a2   :  { %v378_v15 = vmul.f32 0.015625, %v341_v13  ;;  %v385_v16 = vmul.f32 0.015625, %v362_v14  ;;  %v409_v18 = vmul.f32 %v1065_v51, %v1065_v51  ;;  %v416_v22 = vmul.f32 %v1062_v9, %v1062_v9 }
 0x1a4   :  { %v1073_v60 = vsub.f32 %v989_v8, %v378_v15  ;;  %v1076_v1 = vsub.f32 %v984_v3, %v385_v16  ;;  %v433_v21 = vsel %vm323_vm3, %v409_v18, 0.0  ;;  %v454_v32 = vsel %vm323_vm3, %v416_v22, 0.0  ;;  %v1121_v15 = vld [vmem:[%s1243_s3] ss:$0 sm:$0xff] }
 0x1a5   :  { %v365_v23 = vpop.xlane.xlu1 %364  ;;  %431 = vadd.xlane.f32.xlu1 %v430_v20  ;;  %434 = vadd.xlane.f32.xlu0 %v433_v21  ;;  %v344_v25 = vpop.xlane.xlu0 %343 }
 0x1a6   :  { %v386_v26 = vmul.f32 0.015625, %v365_v23  ;;  %v379_v27 = vmul.f32 0.015625, %v344_v25  ;;  %v417_v29 = vmul.f32 %v1076_v1, %v1076_v1  ;;  %v410_v8 = vmul.f32 %v1073_v60, %v1073_v60  ;;  %v1127_v23 = vld [vmem:[%s1244_s4] ss:$0 sm:$0xff] }
 0x1a8   :  { %v1086_v3 = vsub.f32 %v994_v12, %v386_v26  ;;  %v1089_v30 = vsub.f32 %v1001_v17, %v379_v27  ;;  %v457_v33 = vsel %vm323_vm3, %v417_v29, 0.0  ;;  %v436_v42 = vsel %vm323_vm3, %v410_v8, 0.0 }
 0x1a9   :  { %v347_v36 = vpop.xlane.xlu1 %346  ;;  %455 = vadd.xlane.f32.xlu1 %v454_v32  ;;  %458 = vadd.xlane.f32.xlu0 %v457_v33  ;;  %v368_v38 = vpop.xlane.xlu0 %367 }
 0x1aa   :  { %v380_v31 = vmul.f32 0.015625, %v347_v36  ;;  %v387_v39 = vmul.f32 0.015625, %v368_v38  ;;  %v411_v41 = vmul.f32 %v1089_v30, %v1089_v30  ;;  %v418_v45 = vmul.f32 %v1086_v3, %v1086_v3 }
 0x1ac   :  { %v1097_v12 = vsub.f32 %v1009_v24, %v380_v31  ;;  %v1100_v17 = vsub.f32 %v1004_v19, %v387_v39  ;;  %v439_v44 = vsel %vm323_vm3, %v411_v41, 0.0  ;;  %v460_v24 = vsel %vm323_vm3, %v418_v45, 0.0 }
 0x1ad   :  { %v371_v47 = vpop.xlane.xlu1 %370  ;;  %437 = vadd.xlane.f32.xlu1 %v436_v42  ;;  %440 = vadd.xlane.f32.xlu0 %v439_v44 }
 0x1ae   :  { %v388_v48 = vmul.f32 0.015625, %v371_v47  ;;  %v419_v50 = vmul.f32 %v1100_v17, %v1100_v17  ;;  %v412_v35 = vmul.f32 %v1097_v12, %v1097_v12 }
 0x1b0   :  { %v1108_v34 = vsub.f32 %v1014_v28, %v388_v48  ;;  %v463_v19 = vsel %vm323_vm3, %v419_v50, 0.0  ;;  %v442_v56 = vsel %vm323_vm3, %v412_v35, 0.0 }
 0x1b1   :  { %461 = vadd.xlane.f32.xlu1 %v460_v24  ;;  %464 = vadd.xlane.f32.xlu0 %v463_v19 }
 0x1b2   :  { %v420_v57 = vmul.f32 %v1108_v34, %v1108_v34 }
 0x1b4   :  { %v466_v58 = vsel %vm323_vm3, %v420_v57, 0.0 }
 0x1b5   :  { %443 = vadd.xlane.f32.xlu1 %v442_v56 }
 0x1b9   :  { %467 = vadd.xlane.f32.xlu1 %v466_v58 }
 0x222   :  { %v423_v28 = vpop.xlane.xlu0 %422 }
 0x223   :  { %v469_v59 = vmul.f32 0.015625, %v423_v28 }
 0x225   :  { %v485_v61 = vadd.f32 1e-05, %v469_v59 }
 0x226   :  { %v447_v40 = vpop.xlane.xlu0 %446 }
 0x227   :  { %787 = vrsqrt.f32 %v485_v61  ;;  %v477_v49 = vmul.f32 0.015625, %v447_v40 }
 0x229   :  { %v493_v63 = vadd.f32 1e-05, %v477_v49 }
 0x22a   :  { %v426_v0 = vpop.xlane.xlu1 %425  ;;  %v429_v2 = vpop.xlane.xlu0 %428 }
 0x22b   :  { %789 = vrsqrt.f32 %v493_v63  ;;  %v470_v4 = vmul.f32 0.015625, %v426_v0  ;;  %v471_v5 = vmul.f32 0.015625, %v429_v2 }
 0x22d   :  { %v486_v6 = vadd.f32 1e-05, %v470_v4  ;;  %v487_v7 = vadd.f32 1e-05, %v471_v5 }
 0x22e   :  { %v450_v55 = vpop.xlane.xlu1 %449  ;;  %v453_v10 = vpop.xlane.xlu0 %452 }
 0x22f   :  { %791 = vrsqrt.f32 %v486_v6  ;;  %v478_v11 = vmul.f32 0.015625, %v450_v55  ;;  %v479_v13 = vmul.f32 0.015625, %v453_v10 }
 0x230   :  { %793 = vrsqrt.f32 %v487_v7 }
 0x231   :  { %v788_v14 = vpop.eup %787  ;;  %v494_v16 = vadd.f32 1e-05, %v478_v11  ;;  %v495_v18 = vadd.f32 1e-05, %v479_v13 }
 0x232   :  { %v517_v20 = vmul.f32 %v788_v14, %v1023_v37  ;;  %v432_v21 = vpop.xlane.xlu1 %431  ;;  %v435_v22 = vpop.xlane.xlu0 %434 }
 0x233   :  { %795 = vrsqrt.f32 %v494_v16  ;;  %v472_v25 = vmul.f32 0.015625, %v432_v21  ;;  %v473_v26 = vmul.f32 0.015625, %v435_v22 }
 0x234   :  { %v539_v27 = vmul.f32 %v1121_v15, %v517_v20  ;;  %797 = vrsqrt.f32 %v495_v18 }
 0x235   :  { %v790_v29 = vpop.eup %789  ;;  %v488_v8 = vadd.f32 1e-05, %v472_v25  ;;  %v489_v32 = vadd.f32 1e-05, %v473_v26 }
 0x236   :  { %v561_v33 = vadd.f32 %v1127_v23, %v539_v27  ;;  %v525_v37 = vmul.f32 %v790_v29, %v1028_v43  ;;  %v456_v36 = vpop.xlane.xlu1 %455  ;;  %v459_v38 = vpop.xlane.xlu0 %458 }
 0x237   :  { %799 = vrsqrt.f32 %v488_v8  ;;  %v480_v31 = vmul.f32 0.015625, %v456_v36  ;;  %v481_v39 = vmul.f32 0.015625, %v459_v38 }
 0x238   :  { %v715_v41 = vpack.c.bf16 %v561_v33, %v561_v33  ;;  %v547_v42 = vmul.f32 %v1121_v15, %v525_v37  ;;  %801 = vrsqrt.f32 %v489_v32 }
 0x239   :  { %v792_v44 = vpop.eup %791  ;;  %v496_v45 = vadd.f32 1e-05, %v480_v31  ;;  %v497_v47 = vadd.f32 1e-05, %v481_v39 }
 0x23a   :  { %v794_v48 = vpop.eup %793  ;;  %642 = vst.msk [vmem:[%s1245_s5] sm:$0xf] %vm641_vm4, %v715_v41  ;;  %v569_v43 = vadd.f32 %v1127_v23, %v547_v42  ;;  %v518_v50 = vmul.f32 %v792_v44, %v1040_v54  ;;  %v438_v24 = vpop.xlane.xlu1 %437 }
 0x23b   :  { %v441_v19 = vpop.xlane.xlu0 %440  ;;  %v519_v35 = vmul.f32 %v794_v48, %v1037_v53  ;;  %803 = vrsqrt.f32 %v496_v45  ;;  %v474_v56 = vmul.f32 0.015625, %v438_v24 }
 0x23c   :  { %v475_v57 = vmul.f32 0.015625, %v441_v19  ;;  %v723_v58 = vpack.c.bf16 %v569_v43, %v569_v43  ;;  %v540_v28 = vmul.f32 %v1121_v15, %v518_v50  ;;  %805 = vrsqrt.f32 %v497_v47 }
 0x23d   :  { %v796_v59 = vpop.eup %795  ;;  %v541_v61 = vmul.f32 %v1121_v15, %v519_v35  ;;  %v490_v40 = vadd.f32 1e-05, %v474_v56 }
 0x23e   :  { %v491_v49 = vadd.f32 1e-05, %v475_v57  ;;  %v798_v63 = vpop.eup %797  ;;  %650 = vst.msk [vmem:[%s1245_s5 + $0x20] sm:$0xf] %vm641_vm4, %v723_v58  ;;  %v562_v53 = vadd.f32 %v1127_v23, %v540_v28  ;;  %v526_v54 = vmul.f32 %v796_v59, %v1034_v52  ;;  %v462_v0 = vpop.xlane.xlu1 %461 }
 0x23f   :  { %v465_v2 = vpop.xlane.xlu0 %464  ;;  %v563_v4 = vadd.f32 %v1127_v23, %v541_v61  ;;  %v527_v5 = vmul.f32 %v798_v63, %v1053_v46  ;;  %807 = vrsqrt.f32 %v490_v40  ;;  %v482_v6 = vmul.f32 0.015625, %v462_v0 }
 0x240   :  { %v716_v7 = vpack.c.bf16 %v562_v53, %v562_v53  ;;  %v548_v55 = vmul.f32 %v1121_v15, %v526_v54  ;;  %809 = vrsqrt.f32 %v491_v49  ;;  %v483_v10 = vmul.f32 0.015625, %v465_v2 }
 0x241   :  { %v800_v11 = vpop.eup %799  ;;  %v717_v13 = vpack.c.bf16 %v563_v4, %v563_v4  ;;  %v549_v14 = vmul.f32 %v1121_v15, %v527_v5  ;;  %v498_v16 = vadd.f32 1e-05, %v482_v6 }
 0x242   :  { %v802_v18 = vpop.eup %801  ;;  %643 = vst.msk [vmem:[%s1245_s5 + $0x4] sm:$0xf] %vm641_vm4, %v716_v7  ;;  %v570_v52 = vadd.f32 %v1127_v23, %v548_v55  ;;  %v520_v46 = vmul.f32 %v800_v11, %v1050_v62  ;;  %v499_v20 = vadd.f32 1e-05, %v483_v10  ;;  %v444_v21 = vpop.xlane.xlu1 %443 }
 0x243   :  { %644 = vst.msk [vmem:[%s1245_s5 + $0x8] sm:$0xf] %vm641_vm4, %v717_v13  ;;  %v571_v22 = vadd.f32 %v1127_v23, %v549_v14  ;;  %v521_v25 = vmul.f32 %v802_v18, %v1065_v51  ;;  %811 = vrsqrt.f32 %v498_v16  ;;  %v476_v26 = vmul.f32 0.015625, %v444_v21 }
 0x244   :  { %v724_v27 = vpack.c.bf16 %v570_v52, %v570_v52  ;;  %v542_v29 = vmul.f32 %v1121_v15, %v520_v46  ;;  %813 = vrsqrt.f32 %v499_v20 }
 0x245   :  { %v804_v8 = vpop.eup %803  ;;  %v725_v32 = vpack.c.bf16 %v571_v22, %v571_v22  ;;  %v543_v62 = vmul.f32 %v1121_v15, %v521_v25  ;;  %v492_v33 = vadd.f32 1e-05, %v476_v26 }
 0x246   :  { %v806_v37 = vpop.eup %805  ;;  %651 = vst.msk [vmem:[%s1245_s5 + $0x24] sm:$0xf] %vm641_vm4, %v724_v27  ;;  %v564_v36 = vadd.f32 %v1127_v23, %v542_v29  ;;  %v528_v51 = vmul.f32 %v804_v8, %v1062_v9  ;;  %v468_v38 = vpop.xlane.xlu1 %467 }
 0x247   :  { %652 = vst.msk [vmem:[%s1245_s5 + $0x28] sm:$0xf] %vm641_vm4, %v725_v32  ;;  %v565_v31 = vadd.f32 %v1127_v23, %v543_v62  ;;  %v529_v39 = vmul.f32 %v806_v37, %v1076_v1  ;;  %815 = vrsqrt.f32 %v492_v33  ;;  %v484_v41 = vmul.f32 0.015625, %v468_v38 }
 0x248   :  { %v718_v42 = vpack.c.bf16 %v564_v36, %v564_v36  ;;  %v550_v44 = vmul.f32 %v1121_v15, %v528_v51 }
 0x249   :  { %v808_v45 = vpop.eup %807  ;;  %v719_v47 = vpack.c.bf16 %v565_v31, %v565_v31  ;;  %v551_v48 = vmul.f32 %v1121_v15, %v529_v39  ;;  %v500_v9 = vadd.f32 1e-05, %v484_v41 }
 0x24a   :  { %v810_v43 = vpop.eup %809  ;;  %645 = vst.msk [vmem:[%s1245_s5 + $0xc] sm:$0xf] %vm641_vm4, %v718_v42  ;;  %v572_v50 = vadd.f32 %v1127_v23, %v550_v44  ;;  %v522_v1 = vmul.f32 %v808_v45, %v1073_v60 }
 0x24b   :  { %646 = vst.msk [vmem:[%s1245_s5 + $0x10] sm:$0xf] %vm641_vm4, %v719_v47  ;;  %v573_v24 = vadd.f32 %v1127_v23, %v551_v48  ;;  %v523_v19 = vmul.f32 %v810_v43, %v1089_v30  ;;  %817 = vrsqrt.f32 %v500_v9 }
 0x24c   :  { %v726_v35 = vpack.c.bf16 %v572_v50, %v572_v50  ;;  %v544_v56 = vmul.f32 %v1121_v15, %v522_v1 }
 0x24d   :  { %v812_v57 = vpop.eup %811  ;;  %v727_v58 = vpack.c.bf16 %v573_v24, %v573_v24  ;;  %v545_v28 = vmul.f32 %v1121_v15, %v523_v19 }
 0x24e   :  { %v814_v59 = vpop.eup %813  ;;  %653 = vst.msk [vmem:[%s1245_s5 + $0x2c] sm:$0xf] %vm641_vm4, %v726_v35  ;;  %v566_v60 = vadd.f32 %v1127_v23, %v544_v56  ;;  %v530_v61 = vmul.f32 %v812_v57, %v1086_v3 }
 0x24f   :  { %654 = vst.msk [vmem:[%s1245_s5 + $0x30] sm:$0xf] %vm641_vm4, %v727_v58  ;;  %v567_v30 = vadd.f32 %v1127_v23, %v545_v28  ;;  %v531_v40 = vmul.f32 %v814_v59, %v1100_v17 }
 0x250   :  { %v720_v49 = vpack.c.bf16 %v566_v60, %v566_v60  ;;  %v552_v63 = vmul.f32 %v1121_v15, %v530_v61 }
 0x251   :  { %v816_v53 = vpop.eup %815  ;;  %v721_v54 = vpack.c.bf16 %v567_v30, %v567_v30  ;;  %v553_v0 = vmul.f32 %v1121_v15, %v531_v40 }
 0x252   :  { %647 = vst.msk [vmem:[%s1245_s5 + $0x14] sm:$0xf] %vm641_vm4, %v720_v49  ;;  %v574_v3 = vadd.f32 %v1127_v23, %v552_v63  ;;  %v524_v2 = vmul.f32 %v816_v53, %v1097_v12 }
 0x253   :  { %648 = vst.msk [vmem:[%s1245_s5 + $0x18] sm:$0xf] %vm641_vm4, %v721_v54  ;;  %v575_v17 = vadd.f32 %v1127_v23, %v553_v0 }
 0x254   :  { %v728_v4 = vpack.c.bf16 %v574_v3, %v574_v3  ;;  %v546_v5 = vmul.f32 %v1121_v15, %v524_v2 }
 0x255   :  { %v818_v6 = vpop.eup %817  ;;  %v729_v7 = vpack.c.bf16 %v575_v17, %v575_v17 }
 0x256   :  { %655 = vst.msk [vmem:[%s1245_s5 + $0x34] sm:$0xf] %vm641_vm4, %v728_v4  ;;  %v568_v55 = vadd.f32 %v1127_v23, %v546_v5  ;;  %v532_v12 = vmul.f32 %v818_v6, %v1108_v34 }
 0x257   :  { %656 = vst.msk [vmem:[%s1245_s5 + $0x38] sm:$0xf] %vm641_vm4, %v729_v7 }
 0x258   :  { %v722_v10 = vpack.c.bf16 %v568_v55, %v568_v55  ;;  %v554_v11 = vmul.f32 %v1121_v15, %v532_v12 }
 0x25a   :  { %649 = vst.msk [vmem:[%s1245_s5 + $0x1c] sm:$0xf] %vm641_vm4, %v722_v10  ;;  %v576_v13 = vadd.f32 %v1127_v23, %v554_v11 }
 0x25c   :  { %v730_v14 = vpack.c.bf16 %v576_v13, %v576_v13 }
 0x25e   :  { %657 = vst.msk [vmem:[%s1245_s5 + $0x3c] sm:$0xf] %vm641_vm4, %v730_v14 }

</bundles_post_ra>
